<compile_context>
chip_gen: v7x
topology: tpu7x:2x2x1
jax: 0.10.0
libtpu: 0.0.40
codegen_flags: <defaults>
</compile_context>

<pallas_src>
import functools

import jax
import jax.numpy as jnp
from jax.experimental import pallas as pl
from jax.experimental.pallas import tpu as pltpu

NUM_EMBEDDINGS = 50                 # nn.Embedding(50, num_pos_feats)
_OUT_BLOCK_BYTE_BUDGET = 2 << 20    # per output block (Pallas double-buffers it)


def _pos_kernel(col_ref, row_ref, dep_ref, out_ref, *, CF, H, WD):
    """Writes one (1, CF, H, WD) block of the final (B, 3F, h, w*d) volume.

    Grid = (b, section, channel-tile):
      section 0 -> col channels   : out[., c, i, j*d+k] = col_w[j, c]   (sublane broadcast)
      section 1 -> row channels   : out[., c, i, j*d+k] = row_w[i, c]   (lane broadcast)
      section 2 -> depth channels : out[., c, i, j*d+k] = dep_w[k, c]   (sublane broadcast)
    """
    s = pl.program_id(1)
    c0 = pl.multiple_of(pl.program_id(2) * CF, CF)

    @pl.when(s == 0)
    def _():
        blk = col_ref[pl.ds(c0, CF), :]                          # (CF, WD)
        out_ref[0] = jnp.broadcast_to(blk[:, None, :], (CF, H, WD))

    @pl.when(s == 1)
    def _():
        blk = row_ref[pl.ds(c0, CF), :, :]                       # (CF, H, 1)
        out_ref[0] = jnp.broadcast_to(blk, (CF, H, WD))

    @pl.when(s == 2)
    def _():
        blk = dep_ref[pl.ds(c0, CF), :]                          # (CF, WD)
        out_ref[0] = jnp.broadcast_to(blk[:, None, :], (CF, H, WD))


def position_embedding_learned(x_shape, row_w, col_w, dep_w,
                               block_byte_budget=_OUT_BLOCK_BYTE_BUDGET):
    """x_shape: (B, C, h, w, d). Returns pos of shape (B, 3F, h, w, d), float32."""
    B = x_shape[0]
    h, w, d = x_shape[-3], x_shape[-2], x_shape[-1]
    F = row_w.shape[1]
    assert max(h, w, d) <= NUM_EMBEDDINGS, "spatial dims must be <= 50 (embedding table size)"

    WD = w * d

    # Tiny XLA precompute (<< output size): bake the (j, k) -> j*d+k lane pattern once.
    colT = col_w[:w].astype(jnp.float32).T                      # (F, w)
    depT = dep_w[:d].astype(jnp.float32).T                      # (F, d)
    col_pat = jnp.repeat(colT, d, axis=1)                       # (F, w*d): [c, j*d+k] = col_w[j, c]
    dep_pat = jnp.tile(depT, (1, w))                            # (F, w*d): [c, j*d+k] = dep_w[k, c]
    row_pat = row_w[:h].astype(jnp.float32).T[:, :, None]       # (F, h, 1): [c, i, 0]  = row_w[i, c]

    # Channel tile: largest divisor of F whose output block fits the budget
    # (last two block dims stay (h, w*d) == full array dims -> no (8,128) issues).
    ch_bytes = h * WD * 4
    CF = max((c for c in range(1, F + 1)
              if F % c == 0 and c * ch_bytes <= block_byte_budget), default=1)
    nCB = F // CF

    kernel = functools.partial(_pos_kernel, CF=CF, H=h, WD=WD)

    out = pl.pallas_call(
        kernel,
        out_shape=jax.ShapeDtypeStruct((B, 3 * F, h, WD), jnp.float32),
        grid_spec=pltpu.PrefetchScalarGridSpec(
            num_scalar_prefetch=0,
            grid=(B, 3, nCB),
            in_specs=[
                # Constant block indices -> tables stay resident in VMEM, fetched once.
                pl.BlockSpec((F, WD), lambda b, s, c: (0, 0)),       # col_pat
                pl.BlockSpec((F, h, 1), lambda b, s, c: (0, 0, 0)),  # row_pat
                pl.BlockSpec((F, WD), lambda b, s, c: (0, 0)),       # dep_pat
            ],
            out_specs=pl.BlockSpec((1, CF, h, WD),
                                   lambda b, s, c: (b, s * nCB + c, 0, 0)),
        ),
        compiler_params=pltpu.CompilerParams(
            dimension_semantics=("parallel", "parallel", "arbitrary"),
            vmem_limit_bytes=32 << 20),
    )(col_pat, row_pat, dep_pat)

    # Row-major bit-identical reshape: (B, 3F, h, w*d) -> (B, 3F, h, w, d).  Free.
    return out.reshape(B, 3 * F, h, w, d)


def _reference(x_shape, row_w, col_w, dep_w):
    """Pure-JAX reference mirroring the PyTorch forward exactly."""
    B = x_shape[0]
    h, w, d = x_shape[-3], x_shape[-2], x_shape[-1]
    F = row_w.shape[1]
    xp = jnp.broadcast_to(col_w[:w][None, :, None, :], (h, w, d, F))
    yp = jnp.broadcast_to(row_w[:h][:, None, None, :], (h, w, d, F))
    zp = jnp.broadcast_to(dep_w[:d][None, None, :, :], (h, w, d, F))
    pos = jnp.concatenate([xp, yp, zp], axis=-1)               # (h, w, d, 3F)
    pos = jnp.transpose(pos, (3, 0, 1, 2))                     # (3F, h, w, d)
    return jnp.broadcast_to(pos[None], (B,) + pos.shape)


if __name__ == "__main__":
    num_pos_feats = 16
    B, C, h, w, d = 2, 4, 6, 8, 10   # x only provides its shape

    key = jax.random.PRNGKey(0)
    k_row, k_col, k_dep, k_x = jax.random.split(key, 4)
    # nn.init.uniform_ -> U[0, 1)
    row_w = jax.random.uniform(k_row, (NUM_EMBEDDINGS, num_pos_feats), jnp.float32)
    col_w = jax.random.uniform(k_col, (NUM_EMBEDDINGS, num_pos_feats), jnp.float32)
    dep_w = jax.random.uniform(k_dep, (NUM_EMBEDDINGS, num_pos_feats), jnp.float32)

    x = jax.random.normal(k_x, (B, C, h, w, d), jnp.float32)  # values unused

    ref = _reference(x.shape, row_w, col_w, dep_w)

    # 1) Default config: whole channel section per grid step (CF == F).
    pos = position_embedding_learned(x.shape, row_w, col_w, dep_w)
    pos = jax.block_until_ready(pos)
    assert pos.shape == (B, 3 * num_pos_feats, h, w, d), pos.shape
    assert pos.dtype == jnp.float32
    assert jnp.allclose(pos, ref, atol=1e-6, rtol=1e-6)

    # 2) Tiny block budget to force channel tiling (CF < F) and exercise the pl.ds path.
    pos_tiled = position_embedding_learned(x.shape, row_w, col_w, dep_w,
                                           block_byte_budget=h * w * d * 4 * 3)
    pos_tiled = jax.block_until_ready(pos_tiled)
    assert jnp.allclose(pos_tiled, ref, atol=1e-6, rtol=1e-6)

    print("KERNEL_OK")
</pallas_src>

<mosaic_0001>
module attributes {stable_mosaic.version = 11 : i64} {
  func.func @_pos_kernel(%arg0: i32, %arg1: i32, %arg2: i32, %arg3: memref<16x80xf32, #tpu.memory_space<vmem>>, %arg4: memref<16x6x1xf32, #tpu.memory_space<vmem>>, %arg5: memref<16x80xf32, #tpu.memory_space<vmem>>, %arg6: memref<1x16x6x80xf32, #tpu.memory_space<vmem>>) attributes {dimension_semantics = [#tpu.dimension_semantics<parallel>, #tpu.dimension_semantics<parallel>, #tpu.dimension_semantics<arbitrary>], iteration_bounds = array<i64: 2, 3, 1>, scalar_prefetch = 0 : i64, scratch_operands = 0 : i64, tpu.core_type = #tpu.core_type<tc>, window_params = [{pipeline_mode = #tpu.pipeline_mode<synchronous>, transform_indices = @transform_0, window_bounds = array<i64: 16, 80>}, {pipeline_mode = #tpu.pipeline_mode<synchronous>, transform_indices = @transform_1, window_bounds = array<i64: 16, 6, 1>}, {pipeline_mode = #tpu.pipeline_mode<synchronous>, transform_indices = @transform_2, window_bounds = array<i64: 16, 80>}, {transform_indices = @transform_3, window_bounds = array<i64: 1, 16, 6, 80>}]} {
    %c16_i32 = arith.constant 16 : i32
    %0 = arith.muli %arg2, %c16_i32 : i32
    %1 = tpu.assume_multiple %0, 16 : i32
    %c0_i32 = arith.constant 0 : i32
    %2 = arith.cmpi eq, %arg1, %c0_i32 : i32
    %3 = arith.extui %2 : i1 to i32
    %c0_i32_0 = arith.constant 0 : i32
    %4 = arith.cmpi ne, %3, %c0_i32_0 : i32
    scf.if %4 {
      %11 = arith.index_cast %1 : i32 to index
      %c0 = arith.constant 0 : index
      %12 = vector.load %arg3[%11, %c0] : memref<16x80xf32, #tpu.memory_space<vmem>>, vector<16x80xf32>
      %13 = vector.shape_cast %12 : vector<16x80xf32> to vector<16x1x80xf32>
      %14 = vector.shape_cast %13 : vector<16x1x80xf32> to vector<16x1x80xf32>
      %15 = vector.broadcast %14 : vector<16x1x80xf32> to vector<16x6x80xf32>
      %c0_3 = arith.constant 0 : index
      %c0_4 = arith.constant 0 : index
      %c0_5 = arith.constant 0 : index
      %c0_6 = arith.constant 0 : index
      %16 = vector.load %arg6[%c0_3, %c0_4, %c0_5, %c0_6] : memref<1x16x6x80xf32, #tpu.memory_space<vmem>>, vector<1x16x6x80xf32>
      %17 = vector.shape_cast %16 : vector<1x16x6x80xf32> to vector<16x6x80xf32>
      %18 = vector.shape_cast %15 : vector<16x6x80xf32> to vector<1x16x6x80xf32>
      tpu.vector_store %arg6[%c0_3, %c0_4, %c0_5, %c0_6], %18 {strides = array<i32>} : memref<1x16x6x80xf32, #tpu.memory_space<vmem>>, vector<1x16x6x80xf32>,
    } else {
    }
    %c1_i32 = arith.constant 1 : i32
    %5 = arith.cmpi eq, %arg1, %c1_i32 : i32
    %6 = arith.extui %5 : i1 to i32
    %c0_i32_1 = arith.constant 0 : i32
    %7 = arith.cmpi ne, %6, %c0_i32_1 : i32
    scf.if %7 {
      %11 = arith.index_cast %1 : i32 to index
      %c0 = arith.constant 0 : index
      %c0_3 = arith.constant 0 : index
      %12 = vector.load %arg4[%11, %c0, %c0_3] : memref<16x6x1xf32, #tpu.memory_space<vmem>>, vector<16x6x1xf32>
      %13 = vector.shape_cast %12 : vector<16x6x1xf32> to vector<16x6x1xf32>
      %14 = vector.broadcast %13 : vector<16x6x1xf32> to vector<16x6x80xf32>
      %c0_4 = arith.constant 0 : index
      %c0_5 = arith.constant 0 : index
      %c0_6 = arith.constant 0 : index
      %c0_7 = arith.constant 0 : index
      %15 = vector.load %arg6[%c0_4, %c0_5, %c0_6, %c0_7] : memref<1x16x6x80xf32, #tpu.memory_space<vmem>>, vector<1x16x6x80xf32>
      %16 = vector.shape_cast %15 : vector<1x16x6x80xf32> to vector<16x6x80xf32>
      %17 = vector.shape_cast %14 : vector<16x6x80xf32> to vector<1x16x6x80xf32>
      tpu.vector_store %arg6[%c0_4, %c0_5, %c0_6, %c0_7], %17 {strides = array<i32>} : memref<1x16x6x80xf32, #tpu.memory_space<vmem>>, vector<1x16x6x80xf32>,
    } else {
    }
    %c2_i32 = arith.constant 2 : i32
    %8 = arith.cmpi eq, %arg1, %c2_i32 : i32
    %9 = arith.extui %8 : i1 to i32
    %c0_i32_2 = arith.constant 0 : i32
    %10 = arith.cmpi ne, %9, %c0_i32_2 : i32
    scf.if %10 {
      %11 = arith.index_cast %1 : i32 to index
      %c0 = arith.constant 0 : index
      %12 = vector.load %arg5[%11, %c0] : memref<16x80xf32, #tpu.memory_space<vmem>>, vector<16x80xf32>
      %13 = vector.shape_cast %12 : vector<16x80xf32> to vector<16x1x80xf32>
      %14 = vector.shape_cast %13 : vector<16x1x80xf32> to vector<16x1x80xf32>
      %15 = vector.broadcast %14 : vector<16x1x80xf32> to vector<16x6x80xf32>
      %c0_3 = arith.constant 0 : index
      %c0_4 = arith.constant 0 : index
      %c0_5 = arith.constant 0 : index
      %c0_6 = arith.constant 0 : index
      %16 = vector.load %arg6[%c0_3, %c0_4, %c0_5, %c0_6] : memref<1x16x6x80xf32, #tpu.memory_space<vmem>>, vector<1x16x6x80xf32>
      %17 = vector.shape_cast %16 : vector<1x16x6x80xf32> to vector<16x6x80xf32>
      %18 = vector.shape_cast %15 : vector<16x6x80xf32> to vector<1x16x6x80xf32>
      tpu.vector_store %arg6[%c0_3, %c0_4, %c0_5, %c0_6], %18 {strides = array<i32>} : memref<1x16x6x80xf32, #tpu.memory_space<vmem>>, vector<1x16x6x80xf32>,
    } else {
    }
    return
  }
  func.func @transform_0(%arg0: i32, %arg1: i32, %arg2: i32) -> (i32, i32) {
    %c0_i32 = arith.constant 0 : i32
    %c0_i32_0 = arith.constant 0 : i32
    %c0_i32_1 = arith.constant 0 : i32
    return %c0_i32, %c0_i32_0 : i32, i32
  }
  func.func @transform_1(%arg0: i32, %arg1: i32, %arg2: i32) -> (i32, i32, i32) {
    %c0_i32 = arith.constant 0 : i32
    %c0_i32_0 = arith.constant 0 : i32
    %c0_i32_1 = arith.constant 0 : i32
    %c0_i32_2 = arith.constant 0 : i32
    return %c0_i32, %c0_i32_0, %c0_i32_1 : i32, i32, i32
  }
  func.func @transform_2(%arg0: i32, %arg1: i32, %arg2: i32) -> (i32, i32) {
    %c0_i32 = arith.constant 0 : i32
    %c0_i32_0 = arith.constant 0 : i32
    %c0_i32_1 = arith.constant 0 : i32
    return %c0_i32, %c0_i32_0 : i32, i32
  }
  func.func @transform_3(%arg0: i32, %arg1: i32, %arg2: i32) -> (i32, i32, i32, i32) {
    %c1_i32 = arith.constant 1 : i32
    %0 = arith.muli %arg1, %c1_i32 : i32
    %1 = arith.addi %0, %arg2 : i32
    %c0_i32 = arith.constant 0 : i32
    %c0_i32_0 = arith.constant 0 : i32
    %c0_i32_1 = arith.constant 0 : i32
    return %arg0, %1, %c0_i32, %c0_i32_0 : i32, i32, i32, i32
  }
}

</mosaic_0001>

<bundles_post_ra>
// kernel: tpu_custom_call.1
= control target key start
LH: loop header
LB: loop body
LE: loop exit
PB: predicated region body
PF: predicated region fallthrough
CT: control target
= control target key end

     0   :  { %s918_s12 = smov 0   ;;  %s920_s13 = smov 0   ;;  %s1130_s0 = inlined_call_operand.vmem [shape: f32[16,80], index: 0, kind: input, shape index: {}]   ;;  %s1131_s1 = inlined_call_operand.vmem [shape: f32[16,6,1], index: 1, kind: input, shape index: {}]   ;;  %s1132_s2 = inlined_call_operand.vmem [shape: f32[16,80], index: 2, kind: input, shape index: {}]   ;;  %s1133_s3 = inlined_call_operand.vmem [shape: f32[2,48,6,80], index: 3, kind: output, shape index: {}]  }
   0x1   :  { %s922_s14 = smov 0   ;;  %s924_s15 = smov 0  }
   0x2   :  { %s926_s16 = smov 0  }
   0x3 LB: > { %s28_s17 = sadd.s32 1, %s885_s14  ;;  %s32_s18 = sadd.s32 1, %s889_s15  ;;  %s893_s16 = sphi %s926_s16, %s13_s16   ;;  %s889_s15 = sphi %s924_s15, %s1137_s15   ;;  %s885_s14 = sphi %s922_s14, %s1136_s14   ;;  %s881_s13 = sphi %s920_s13, %s1135_s13   ;;  %s877_s12 = sphi %s918_s12, %s1134_s12  }
   0x4   : > { %p30_p0 = scmp.ge.s32.totalorder %s28_s17, 3  ;;  %p801_p1 = scmp.ge.s32.totalorder %s893_s16, 1 }
   0x5   : > { %p150_p2 = scmp.lt.s32.totalorder %s893_s16, 7 }
   0x6   : > { %s1139_s17 = smov (%p30_p0, %s28_s17), 0  ;;  %s1141_s18 = smov (!%p30_p0, %s32_s18), %s889_s15 }
   0x7   : > { %p151_p3 = pnand %p801_p1, %p150_p2  ;;  %p34_p4 = scmp.ge.s32.totalorder %s1141_s18, 2 }
   0x8   : > { %s802_s19 = sshll.u32 (!%p151_p3), %s877_s12, 4  ;;  %p176_p5 = scmp.lt.s32.totalorder (!%p151_p3), %s881_s13, 1 }
   0x9   : > { %s1143_s18 = smov (%p34_p4, %s1141_s18), 0  ;;  %154 = sbr.rel (%p151_p3) target bundleno = 226 (0xe2), region = 32 }
   0xa   : > { %p178_p6 = scmp.lt.s32.totalorder (!%p151_p3), %s802_s19, 47  ;;  %p804_p7 = scmp.ne.s32.totalorder (!%p151_p3), %s877_s12, 0 }
  0x10   : > { %s1145_s13 = smov (!%p176_p5, %s881_s13), 1  ;;  %s1147_s19 = smov (!%p178_p6, %s802_s19), 47 }
  0x11   : > { %s809_s20 = smul.u32 48, %s1145_s13  ;;  %v192_v0 = vld [vmem:[%s1130_s0] sm:$0xff] (!%p804_p7)  ;;  %v200_v1 = vlaneseq (!%p804_p7)  ;;  %v193_v2 = vld [vmem:[%s1130_s0 + $0x8] sm:$0xff] (!%p804_p7)  ;;  %v895_v3 = vmov (!%p804_p7), 1966171168   ;;  %vm374_vm0 = vcmask (!%p804_p7), 652288  }
  0x12   : > { %190 = sbr.rel (%p804_p7) target bundleno = 41 (0x29), region = 36  ;;  %v198_v4 = vunpack.c.l.s4 (!%p804_p7), %v895_v3  ;;  %v196_v7 = vcombine.high (!%p804_p7), %v192_v0, %v192_v0  ;;  %v245_v8 = vcombine.high (!%p804_p7), %v193_v2, %v193_v2 }
  0x13   : > { %s181_s21 = sadd.s32 %s809_s20, %s1147_s19  ;;  %v201_v5 = vshrl.u32 (!%p804_p7), %v200_v1, 7 }
  0x14   : > { %s803_s22 = sshll.u32 %s181_s21, 3  ;;  %v199_v6 = vunpack.c.0.s8 (!%p804_p7), %v198_v4 }
  0x15   : > { %s954_s25 = scalar_lea.vmem %s1133_s3, %s803_s22  ;;  %v296_v10 = vsub.s32 (!%p804_p7), 0, %v201_v5 }
  0x16   : > { %v202_v9 = vsub.s32 (!%p804_p7), %v199_v6, %v201_v5 }
  0x18   : > { %v203_v11 = vrot.slane (!%p804_p7), %v192_v0, %v202_v9  ;;  %v210_v12 = vrot.slane (!%p804_p7), %v196_v7, %v202_v9  ;;  %v252_v13 = vrot.slane (!%p804_p7), %v193_v2, %v202_v9  ;;  %v259_v14 = vrot.slane (!%p804_p7), %v245_v8, %v202_v9 }
  0x1a   : > { %v219_v15 = vrot.slane %v203_v11, %v202_v9  ;;  %v211_v16 = vcombine.high %v203_v11, %v203_v11  ;;  %v226_v17 = vrot.slane %v210_v12, %v202_v9  ;;  %v212_v18 = vcombine.high %v210_v12, %v210_v12 }
  0x1b   : > { %v268_v19 = vrot.slane %v252_v13, %v202_v9  ;;  %v260_v20 = vcombine.high %v252_v13, %v252_v13  ;;  %v275_v21 = vrot.slane %v259_v14, %v202_v9  ;;  %v261_v22 = vcombine.high %v259_v14, %v259_v14 }
  0x1c   : > { %v297_v23 = vrot.slane %v219_v15, %v296_v10  ;;  %v233_v24 = vrot.slane %v211_v16, %v202_v9  ;;  %v241_v25 = vcombine.high %v219_v15, %v219_v15  ;;  %v313_v26 = vrot.slane %v226_v17, %v296_v10 }
  0x1d   : > { %v240_v27 = vrot.slane %v212_v18, %v202_v9  ;;  %v242_v28 = vcombine.high %v226_v17, %v226_v17  ;;  %v329_v29 = vrot.slane %v268_v19, %v296_v10  ;;  %v282_v30 = vrot.slane %v260_v20, %v202_v9 }
  0x1e   : > { %375 = vst.msk [vmem:[%s954_s25] sm:$0x3f] %vm374_vm0, %v297_v23  ;;  %v301_v31 = vrot.slane %v233_v24, %v296_v10  ;;  %v305_v32 = vrot.slane %v241_v25, %v296_v10  ;;  %v243_v33 = vcombine.high %v233_v24, %v233_v24  ;;  %379 = vst.msk [vmem:[%s954_s25 + $0x20] sm:$0x3f] %vm374_vm0, %v313_v26 }
  0x1f   : > { %v290_v34 = vcombine.high %v268_v19, %v268_v19  ;;  %v317_v35 = vrot.slane %v240_v27, %v296_v10  ;;  %v321_v36 = vrot.slane %v242_v28, %v296_v10  ;;  %v244_v37 = vcombine.high %v240_v27, %v240_v27  ;;  %383 = vst.msk [vmem:[%s954_s25 + $0x40] sm:$0x3f] %vm374_vm0, %v329_v29 }
  0x20   : > { %v333_v38 = vrot.slane %v282_v30, %v296_v10  ;;  %376 = vst.msk [vmem:[%s954_s25 + $0x8] sm:$0x3f] %vm374_vm0, %v301_v31  ;;  %377 = vst.msk [vmem:[%s954_s25 + $0x10] sm:$0x3f] %vm374_vm0, %v305_v32  ;;  %v309_v39 = vrot.slane %v243_v33, %v296_v10  ;;  %v292_v41 = vcombine.high %v282_v30, %v282_v30 }
  0x21   : > { %v337_v40 = vrot.slane %v290_v34, %v296_v10  ;;  %v345_v42 = vrot.slane %v275_v21, %v296_v10  ;;  %380 = vst.msk [vmem:[%s954_s25 + $0x28] sm:$0x3f] %vm374_vm0, %v317_v35  ;;  %381 = vst.msk [vmem:[%s954_s25 + $0x30] sm:$0x3f] %vm374_vm0, %v321_v36  ;;  %v325_v43 = vrot.slane %v244_v37, %v296_v10 }
  0x22   : > { %384 = vst.msk [vmem:[%s954_s25 + $0x48] sm:$0x3f] %vm374_vm0, %v333_v38  ;;  %v289_v44 = vrot.slane %v261_v22, %v202_v9  ;;  %v291_v45 = vcombine.high %v275_v21, %v275_v21  ;;  %378 = vst.msk [vmem:[%s954_s25 + $0x18] sm:$0x3f] %vm374_vm0, %v309_v39  ;;  %v341_v46 = vrot.slane %v292_v41, %v296_v10 }
  0x23   : > { %385 = vst.msk [vmem:[%s954_s25 + $0x50] sm:$0x3f] %vm374_vm0, %v337_v40  ;;  %387 = vst.msk [vmem:[%s954_s25 + $0x60] sm:$0x3f] %vm374_vm0, %v345_v42 }
  0x24   : > { %382 = vst.msk [vmem:[%s954_s25 + $0x38] sm:$0x3f] %vm374_vm0, %v325_v43  ;;  %v349_v47 = vrot.slane %v289_v44, %v296_v10  ;;  %v353_v48 = vrot.slane %v291_v45, %v296_v10  ;;  %v293_v49 = vcombine.high %v289_v44, %v289_v44  ;;  %386 = vst.msk [vmem:[%s954_s25 + $0x58] sm:$0x3f] %vm374_vm0, %v341_v46 }
  0x26   : > { %388 = vst.msk [vmem:[%s954_s25 + $0x68] sm:$0x3f] %vm374_vm0, %v349_v47  ;;  %389 = vst.msk [vmem:[%s954_s25 + $0x70] sm:$0x3f] %vm374_vm0, %v353_v48  ;;  %v357_v50 = vrot.slane %v293_v49, %v296_v10 }
  0x28   : > { %390 = vst.msk [vmem:[%s954_s25 + $0x78] sm:$0x3f] %vm374_vm0, %v357_v50 }
  0x29 PF: > { %p805_p8 = scmp.ne.s32.totalorder %s877_s12, 1 }
  0x2a   : > { %v399_v51 = vld [vmem:[%s1131_s1 + $0x10] sm:$0x3f] (!%p805_p8)  ;;  %v397_v52 = vld [vmem:[%s1131_s1] sm:$0x3f] (!%p805_p8)  ;;  %v896_v53 = vmov (!%p805_p8), 0   ;;  %vm493_vm1 = vcmask (!%p805_p8), 652288  }
  0x2b   : > { %394 = sbr.rel (%p805_p8) target bundleno = 201 (0xc9), region = 40  ;;  %854 = vset.pattern.permute.xlu1 (!%p805_p8), %v896_v53  ;;  %853 = vset.pattern.permute.xlu0 (!%p805_p8), %v896_v53  ;;  %v400_v54 = vld [vmem:[%s1131_s1 + $0x18] sm:$0x3f] (!%p805_p8)  ;;  %v398_v55 = vld [vmem:[%s1131_s1 + $0x8] sm:$0x3f] (!%p805_p8) }
  0x2c   : > { %425 = vperm.xlu1 (!%p805_p8), %854, %v399_v51   ;;  %415 = vperm.xlu0 (!%p805_p8), %853, %v397_v52   ;;  %v402_v56 = vld [vmem:[%s1131_s1 + $0x28] sm:$0x3f] (!%p805_p8)  ;;  %v401_v57 = vld [vmem:[%s1131_s1 + $0x20] sm:$0x3f] (!%p805_p8)  ;;  %v404_v58 = vld [vmem:[%s1131_s1 + $0x38] sm:$0x3f] (!%p805_p8) }
  0x2d   : > { %v403_v59 = vld [vmem:[%s1131_s1 + $0x30] sm:$0x3f] (!%p805_p8)  ;;  %v406_v60 = vld [vmem:[%s1131_s1 + $0x48] sm:$0x3f] (!%p805_p8)  ;;  %v405_v61 = vld [vmem:[%s1131_s1 + $0x40] sm:$0x3f] (!%p805_p8) }
  0x2e   : > { %v408_v62 = vld [vmem:[%s1131_s1 + $0x58] sm:$0x3f] (!%p805_p8)  ;;  %v407_v63 = vld [vmem:[%s1131_s1 + $0x50] sm:$0x3f] (!%p805_p8)  ;;  %v410_v0 = vld [vmem:[%s1131_s1 + $0x68] sm:$0x3f] (!%p805_p8) }
  0x2f   : > { %v409_v1 = vld [vmem:[%s1131_s1 + $0x60] sm:$0x3f] (!%p805_p8)  ;;  %v412_v2 = vld [vmem:[%s1131_s1 + $0x78] sm:$0x3f] (!%p805_p8)  ;;  %v411_v3 = vld [vmem:[%s1131_s1 + $0x70] sm:$0x3f] (!%p805_p8) }
  0x30   : > { %430 = vperm.xlu1 (!%p805_p8), %854, %v400_v54   ;;  %420 = vperm.xlu0 (!%p805_p8), %853, %v398_v55  }
  0x34   : > { %440 = vperm.xlu1 %854, %v402_v56   ;;  %435 = vperm.xlu0 %853, %v401_v57  }
  0x38   : > { %450 = vperm.xlu1 %854, %v404_v58   ;;  %445 = vperm.xlu0 %853, %v403_v59  }
  0x3c   : > { %460 = vperm.xlu1 %854, %v406_v60   ;;  %455 = vperm.xlu0 %853, %v405_v61  }
  0x40   : > { %470 = vperm.xlu1 %854, %v408_v62   ;;  %465 = vperm.xlu0 %853, %v407_v63  }
  0x44   : > { %480 = vperm.xlu1 %854, %v410_v0   ;;  %475 = vperm.xlu0 %853, %v409_v1  }
  0x48   : > { %490 = vperm.xlu1 %854, %v412_v2   ;;  %485 = vperm.xlu0 %853, %v411_v3  }
  0xab   : > { %v426_v4 = vpop.permute.xlu1 %425  ;;  %v416_v5 = vpop.permute.xlu0 %415 }
  0xac   : > { %496 = vst.msk [vmem:[%s954_s25 + $0x10] sm:$0x3f] %vm493_vm1, %v426_v4  ;;  %494 = vst.msk [vmem:[%s954_s25] sm:$0x3f] %vm493_vm1, %v416_v5 }
  0xaf   : > { %v431_v6 = vpop.permute.xlu1 %430  ;;  %v421_v7 = vpop.permute.xlu0 %420 }
  0xb0   : > { %497 = vst.msk [vmem:[%s954_s25 + $0x18] sm:$0x3f] %vm493_vm1, %v431_v6  ;;  %495 = vst.msk [vmem:[%s954_s25 + $0x8] sm:$0x3f] %vm493_vm1, %v421_v7 }
  0xb3   : > { %v441_v8 = vpop.permute.xlu1 %440  ;;  %v436_v9 = vpop.permute.xlu0 %435 }
  0xb4   : > { %499 = vst.msk [vmem:[%s954_s25 + $0x28] sm:$0x3f] %vm493_vm1, %v441_v8  ;;  %498 = vst.msk [vmem:[%s954_s25 + $0x20] sm:$0x3f] %vm493_vm1, %v436_v9 }
  0xb7   : > { %v451_v10 = vpop.permute.xlu1 %450  ;;  %v446_v11 = vpop.permute.xlu0 %445 }
  0xb8   : > { %501 = vst.msk [vmem:[%s954_s25 + $0x38] sm:$0x3f] %vm493_vm1, %v451_v10  ;;  %500 = vst.msk [vmem:[%s954_s25 + $0x30] sm:$0x3f] %vm493_vm1, %v446_v11 }
  0xbb   : > { %v461_v12 = vpop.permute.xlu1 %460  ;;  %v456_v13 = vpop.permute.xlu0 %455 }
  0xbc   : > { %503 = vst.msk [vmem:[%s954_s25 + $0x48] sm:$0x3f] %vm493_vm1, %v461_v12  ;;  %502 = vst.msk [vmem:[%s954_s25 + $0x40] sm:$0x3f] %vm493_vm1, %v456_v13 }
  0xbf   : > { %v471_v14 = vpop.permute.xlu1 %470  ;;  %v466_v15 = vpop.permute.xlu0 %465 }
  0xc0   : > { %505 = vst.msk [vmem:[%s954_s25 + $0x58] sm:$0x3f] %vm493_vm1, %v471_v14  ;;  %504 = vst.msk [vmem:[%s954_s25 + $0x50] sm:$0x3f] %vm493_vm1, %v466_v15 }
  0xc3   : > { %v481_v16 = vpop.permute.xlu1 %480  ;;  %v476_v17 = vpop.permute.xlu0 %475 }
  0xc4   : > { %507 = vst.msk [vmem:[%s954_s25 + $0x68] sm:$0x3f] %vm493_vm1, %v481_v16  ;;  %506 = vst.msk [vmem:[%s954_s25 + $0x60] sm:$0x3f] %vm493_vm1, %v476_v17 }
  0xc7   : > { %v491_v18 = vpop.permute.xlu1 %490  ;;  %v486_v19 = vpop.permute.xlu0 %485 }
  0xc8   : > { %509 = vst.msk [vmem:[%s954_s25 + $0x78] sm:$0x3f] %vm493_vm1, %v491_v18  ;;  %508 = vst.msk [vmem:[%s954_s25 + $0x70] sm:$0x3f] %vm493_vm1, %v486_v19 }
  0xc9 PF: > { %p806_p9 = scmp.ne.s32.totalorder %s877_s12, 2 }
  0xca   : > { %v515_v20 = vld [vmem:[%s1132_s2] sm:$0xff] (!%p806_p9)  ;;  %v523_v21 = vlaneseq (!%p806_p9)  ;;  %v516_v22 = vld [vmem:[%s1132_s2 + $0x8] sm:$0xff] (!%p806_p9)  ;;  %v897_v23 = vmov (!%p806_p9), 1966171168   ;;  %vm697_vm2 = vcmask (!%p806_p9), 652288  }
  0xcb   : > { %513 = sbr.rel (%p806_p9) target bundleno = 226 (0xe2), region = 44  ;;  %v521_v24 = vunpack.c.l.s4 (!%p806_p9), %v897_v23  ;;  %v519_v27 = vcombine.high (!%p806_p9), %v515_v20, %v515_v20  ;;  %v568_v28 = vcombine.high (!%p806_p9), %v516_v22, %v516_v22 }
  0xcc   : > { %v524_v25 = vshrl.u32 (!%p806_p9), %v523_v21, 7 }
  0xcd   : > { %v522_v26 = vunpack.c.0.s8 (!%p806_p9), %v521_v24 }
  0xce   : > { %v619_v30 = vsub.s32 (!%p806_p9), 0, %v524_v25 }
  0xcf   : > { %v525_v29 = vsub.s32 (!%p806_p9), %v522_v26, %v524_v25 }
  0xd1   : > { %v526_v31 = vrot.slane (!%p806_p9), %v515_v20, %v525_v29  ;;  %v533_v32 = vrot.slane (!%p806_p9), %v519_v27, %v525_v29  ;;  %v575_v33 = vrot.slane (!%p806_p9), %v516_v22, %v525_v29  ;;  %v582_v34 = vrot.slane (!%p806_p9), %v568_v28, %v525_v29 }
  0xd3   : > { %v542_v35 = vrot.slane %v526_v31, %v525_v29  ;;  %v534_v36 = vcombine.high %v526_v31, %v526_v31  ;;  %v549_v37 = vrot.slane %v533_v32, %v525_v29  ;;  %v535_v38 = vcombine.high %v533_v32, %v533_v32 }
  0xd4   : > { %v591_v39 = vrot.slane %v575_v33, %v525_v29  ;;  %v583_v40 = vcombine.high %v575_v33, %v575_v33  ;;  %v598_v41 = vrot.slane %v582_v34, %v525_v29  ;;  %v584_v42 = vcombine.high %v582_v34, %v582_v34 }
  0xd5   : > { %v620_v43 = vrot.slane %v542_v35, %v619_v30  ;;  %v556_v44 = vrot.slane %v534_v36, %v525_v29  ;;  %v564_v45 = vcombine.high %v542_v35, %v542_v35  ;;  %v636_v46 = vrot.slane %v549_v37, %v619_v30 }
  0xd6   : > { %v563_v47 = vrot.slane %v535_v38, %v525_v29  ;;  %v565_v48 = vcombine.high %v549_v37, %v549_v37  ;;  %v652_v49 = vrot.slane %v591_v39, %v619_v30  ;;  %v605_v50 = vrot.slane %v583_v40, %v525_v29 }
  0xd7   : > { %698 = vst.msk [vmem:[%s954_s25] sm:$0x3f] %vm697_vm2, %v620_v43  ;;  %v624_v51 = vrot.slane %v556_v44, %v619_v30  ;;  %v628_v52 = vrot.slane %v564_v45, %v619_v30  ;;  %v566_v53 = vcombine.high %v556_v44, %v556_v44  ;;  %702 = vst.msk [vmem:[%s954_s25 + $0x20] sm:$0x3f] %vm697_vm2, %v636_v46 }
  0xd8   : > { %v613_v54 = vcombine.high %v591_v39, %v591_v39  ;;  %v640_v55 = vrot.slane %v563_v47, %v619_v30  ;;  %v644_v56 = vrot.slane %v565_v48, %v619_v30  ;;  %v567_v57 = vcombine.high %v563_v47, %v563_v47  ;;  %706 = vst.msk [vmem:[%s954_s25 + $0x40] sm:$0x3f] %vm697_vm2, %v652_v49 }
  0xd9   : > { %v656_v58 = vrot.slane %v605_v50, %v619_v30  ;;  %699 = vst.msk [vmem:[%s954_s25 + $0x8] sm:$0x3f] %vm697_vm2, %v624_v51  ;;  %700 = vst.msk [vmem:[%s954_s25 + $0x10] sm:$0x3f] %vm697_vm2, %v628_v52  ;;  %v632_v59 = vrot.slane %v566_v53, %v619_v30  ;;  %v615_v61 = vcombine.high %v605_v50, %v605_v50 }
  0xda   : > { %v660_v60 = vrot.slane %v613_v54, %v619_v30  ;;  %v668_v62 = vrot.slane %v598_v41, %v619_v30  ;;  %703 = vst.msk [vmem:[%s954_s25 + $0x28] sm:$0x3f] %vm697_vm2, %v640_v55  ;;  %704 = vst.msk [vmem:[%s954_s25 + $0x30] sm:$0x3f] %vm697_vm2, %v644_v56  ;;  %v648_v63 = vrot.slane %v567_v57, %v619_v30 }
  0xdb   : > { %707 = vst.msk [vmem:[%s954_s25 + $0x48] sm:$0x3f] %vm697_vm2, %v656_v58  ;;  %v612_v0 = vrot.slane %v584_v42, %v525_v29  ;;  %v614_v1 = vcombine.high %v598_v41, %v598_v41  ;;  %701 = vst.msk [vmem:[%s954_s25 + $0x18] sm:$0x3f] %vm697_vm2, %v632_v59  ;;  %v664_v2 = vrot.slane %v615_v61, %v619_v30 }
  0xdc   : > { %708 = vst.msk [vmem:[%s954_s25 + $0x50] sm:$0x3f] %vm697_vm2, %v660_v60  ;;  %710 = vst.msk [vmem:[%s954_s25 + $0x60] sm:$0x3f] %vm697_vm2, %v668_v62 }
  0xdd   : > { %705 = vst.msk [vmem:[%s954_s25 + $0x38] sm:$0x3f] %vm697_vm2, %v648_v63  ;;  %v672_v3 = vrot.slane %v612_v0, %v619_v30  ;;  %v676_v4 = vrot.slane %v614_v1, %v619_v30  ;;  %v616_v5 = vcombine.high %v612_v0, %v612_v0  ;;  %709 = vst.msk [vmem:[%s954_s25 + $0x58] sm:$0x3f] %vm697_vm2, %v664_v2 }
  0xdf   : > { %711 = vst.msk [vmem:[%s954_s25 + $0x68] sm:$0x3f] %vm697_vm2, %v672_v3  ;;  %712 = vst.msk [vmem:[%s954_s25 + $0x70] sm:$0x3f] %vm697_vm2, %v676_v4  ;;  %v680_v6 = vrot.slane %v616_v5, %v619_v30 }
  0xe1   : > { %713 = vst.msk [vmem:[%s954_s25 + $0x78] sm:$0x3f] %vm697_vm2, %v680_v6 }
  0xe2 PF: > { %s13_s16 = sadd.s32 1, %s893_s16   ;;  %s1134_s12 = smov %s885_s14 }
  0xe3   : > { %p10_p10 = scmp.ge.s32.totalorder %s13_s16, 8   ;;  %s1135_s13 = smov %s889_s15 }
  0xe4   : > { %s1136_s14 = smov %s1139_s17  ;;  %s1137_s15 = smov %s1143_s18 }
  0xe5   :  { %12 = sbr.rel (!%p10_p10) target bundleno = 3 (0x3), region = 74 }

</bundles_post_ra>
